<compile_context>
chip_gen: v7x
topology: tpu7x:2x2x1
jax: 0.10.0
libtpu: 0.0.40
codegen_flags: <defaults>
</compile_context>

<pallas_src>
import functools

import jax
import jax.numpy as jnp
from jax.experimental import pallas as pl
from jax.experimental.pallas import tpu as pltpu

EPS = 1e-5     # nn.BatchNorm2d default eps
K_MAX = 5      # largest n-gram
NEG = -1e30    # "masked" additive bias (relu(-1e30 + finite) == 0)


def textcnn_kernel(x_ref, w_ref, bias_ref, wl_ref, bl_ref, o_ref, xcol_ref,
                   *, T_pad, E, F):
    """x_ref: [TB, L_pad, E] bf16 (compact); w_ref: [5E, 3F] bf16 (BN-scale folded);
    bias_ref: [T_pad, 3F] f32 (conv-bias+BN shift, -1e30 at invalid positions);
    wl_ref: [3F, C_pad] bf16; bl_ref: [1, C_pad] f32; o_ref: [TB, C_pad] f32;
    xcol_ref: [TB, T_pad, 5E] bf16 VMEM scratch."""
    TB = x_ref.shape[0]
    F3 = 3 * F

    x = x_ref[...]                                                # [TB, L_pad, E] bf16
    # In-kernel im2col: 5 time-shifted slices packed along the 5E contraction axis
    # of a VMEM scratch (no 5x-inflated HBM tensor anymore).
    for dt in range(K_MAX):
        xcol_ref[:, :, dt * E:(dt + 1) * E] = x[:, dt:dt + T_pad, :]

    # Single fused conv matmul for all three branches: deep contraction (5E),
    # 3F output lanes, f32 accumulation on the MXU.
    acc = jnp.dot(xcol_ref[...].reshape(TB * T_pad, K_MAX * E), w_ref[...],
                  preferred_element_type=jnp.float32)             # [TB*T_pad, 3F]

    # bias_ref already folds conv bias + eval-mode BN shift and is -1e30 at time
    # positions invalid for that n-gram branch (and at the zero time padding), so
    # ReLU zeroes them and one global max over time is exact.
    y = jnp.maximum(acc.reshape(TB, T_pad, F3) + bias_ref[...], 0.0)
    pooled = jnp.max(y, axis=1)                                   # [TB, 3F]

    # TODO(synk): nn.Dropout is identity in eval mode; training-mode RNG mask not implemented.
    out = jnp.dot(pooled.astype(jnp.bfloat16), wl_ref[...],
                  preferred_element_type=jnp.float32)
    o_ref[...] = (out + bl_ref[...]).astype(o_ref.dtype)


def _block_budget():
    """(max batch tile, scoped-VMEM limit bytes) per TPU generation."""
    try:
        kind = jax.devices()[0].device_kind.lower()
    except Exception:
        kind = ""
    if "v7" in kind:                       # 64 MiB physical VMEM per TensorCore
        return 128, 40 * 1024 * 1024
    if "v5" in kind or "v6" in kind:       # 128 MiB physical VMEM
        return 256, 64 * 1024 * 1024
    return 128, 32 * 1024 * 1024           # unknown generation: conservative


def _choose_tb(B, tb_max):
    if B <= 64:
        return B
    if B <= tb_max:
        # >= 2 grid steps so the "parallel" batch axis can span both TCs on v7x.
        return min(tb_max, -(-((B + 1) // 2) // 8) * 8)
    return tb_max


def textcnn_forward(x_nchw, kp, class_size, maxlength):
    """x_nchw: [B, 1, L, E] (PyTorch layout). Returns [B, class_size]."""
    assert x_nchw.shape[1] == 1
    B, _, L, E = x_nchw.shape
    # Pool windows were fixed with config=59 at construction time.
    assert maxlength == 59 and L == 59, "TextCNN pooling only consistent for maxlength == 59"

    F3 = kp['bias2d'].shape[-1]
    F = F3 // 3
    T_pad = kp['bias2d'].shape[0]
    C_pad = kp['wl'].shape[-1]

    TB_MAX, vmem_limit = _block_budget()
    TB = _choose_tb(B, TB_MAX)
    n_blk = -(-B // TB)
    B_pad = n_blk * TB

    # Compact activation stream: [B_pad, L_pad, E] bf16. The im2col now happens
    # inside the kernel's VMEM, so only the raw input bytes cross HBM.
    L_pad = -(-(T_pad + K_MAX - 1) // 8) * 8
    x = x_nchw[:, 0].astype(jnp.bfloat16)                         # [B, L, E]
    x = jnp.pad(x, ((0, B_pad - B), (0, L_pad - L), (0, 0)))      # zero batch/time pad

    kern = functools.partial(textcnn_kernel, T_pad=T_pad, E=E, F=F)
    out = pl.pallas_call(
        kern,
        out_shape=jax.ShapeDtypeStruct((B_pad, C_pad), jnp.float32),
        grid=(n_blk,),
        in_specs=[
            pl.BlockSpec((TB, L_pad, E), lambda i: (i, 0, 0)),     # compact x (tiled)
            pl.BlockSpec((K_MAX * E, F3), lambda i: (0, 0)),       # fused conv weights
            pl.BlockSpec((T_pad, F3), lambda i: (0, 0)),           # folded shift + mask
            pl.BlockSpec((F3, C_pad), lambda i: (0, 0)),           # linear weight (bf16)
            pl.BlockSpec((1, C_pad), lambda i: (0, 0)),            # linear bias
        ],
        out_specs=pl.BlockSpec((TB, C_pad), lambda i: (i, 0)),
        scratch_shapes=[pltpu.VMEM((TB, T_pad, K_MAX * E), jnp.bfloat16)],
        compiler_params=pltpu.CompilerParams(
            dimension_semantics=("parallel",),                     # megacore on v7x
            vmem_limit_bytes=vmem_limit),
    )(x, kp['w_all'], kp['bias2d'], kp['wl'], kp['bl'])
    return out[:B, :class_size]


# ----------------------- parameter setup (deterministic) -----------------------

def init_pt_params(key, E, F, C):
    """PyTorch-shaped parameters (what nn.Module.__init__ would hold)."""
    ks = jax.random.split(key, 20)
    p = {}
    i = 0
    for k in (3, 4, 5):
        p[f'conv{k}_w'] = 0.1 * jax.random.normal(ks[i], (F, 1, k, E), jnp.float32); i += 1
        p[f'conv{k}_b'] = 0.1 * jax.random.normal(ks[i], (F,), jnp.float32); i += 1
        p[f'bn{k}_gamma'] = 1.0 + 0.1 * jax.random.normal(ks[i], (F,), jnp.float32); i += 1
        p[f'bn{k}_beta'] = 0.1 * jax.random.normal(ks[i], (F,), jnp.float32); i += 1
        p[f'bn{k}_mean'] = 0.1 * jax.random.normal(ks[i], (F,), jnp.float32); i += 1
        p[f'bn{k}_var'] = 1.0 + 0.1 * jnp.abs(jax.random.normal(ks[i], (F,), jnp.float32)); i += 1
    p['lin_w'] = 0.1 * jax.random.normal(ks[i], (C, 3 * F), jnp.float32); i += 1
    p['lin_b'] = 0.1 * jax.random.normal(ks[i], (C,), jnp.float32); i += 1
    return p


def to_kernel_params(p, E, F, C, L):
    """Fuse the three conv branches, fold conv-bias + eval-mode BN (+ validity mask)
    into a [T_pad, 3F] additive bias, reorder & pad the classifier, cast streamed
    weights to bf16."""
    F3 = 3 * F
    T_pad = -(-(L - 2) // 8) * 8                        # 57 -> 64 (sublane aligned)
    w_all = jnp.zeros((K_MAX, E, F3), jnp.float32)      # zero taps for dt >= k
    bias2d = jnp.full((T_pad, F3), NEG, jnp.float32)
    t = jnp.arange(T_pad).reshape(T_pad, 1)
    for u, k in enumerate((3, 4, 5)):
        scale = p[f'bn{k}_gamma'] / jnp.sqrt(p[f'bn{k}_var'] + EPS)
        # [F, 1, k, E] -> [k, E, F], BN scale folded into the weights.
        w = jnp.transpose(p[f'conv{k}_w'][:, 0], (1, 2, 0)) * scale.reshape(1, 1, F)
        w_all = w_all.at[:k, :, u * F:(u + 1) * F].set(w)
        shift_k = (p[f'conv{k}_b'] - p[f'bn{k}_mean']) * scale + p[f'bn{k}_beta']
        # Valid conv positions for this branch: t < L - k + 1; -1e30 elsewhere.
        bias2d = bias2d.at[:, u * F:(u + 1) * F].set(
            jnp.where(t < (L - k + 1), shift_k.reshape(1, F), NEG))

    kp = {
        'w_all': w_all.reshape(K_MAX * E, F3).astype(jnp.bfloat16),  # matches im2col (dt*E+e)
        'bias2d': bias2d,                                            # f32 [T_pad, 3F]
    }
    # PyTorch flatten order of cat([x1,x2,x3],-1).view(B,1,-1) is f*3 + unit; the
    # kernel's pooled features are unit-major (u*F + f), so reorder linear columns,
    # then pad classifier columns to a multiple of 128 (lane-dense output stores).
    wl = jnp.transpose(p['lin_w'].reshape(C, F, 3), (2, 1, 0)).reshape(F3, C)
    C_pad = -(-C // 128) * 128
    kp['wl'] = jnp.pad(wl, ((0, 0), (0, C_pad - C))).astype(jnp.bfloat16)
    kp['bl'] = jnp.pad(p['lin_b'].reshape(1, C), ((0, 0), (0, C_pad - C)))
    return kp


# ----------------------------- pure-JAX reference ------------------------------

def reference_forward(x_nchw, p):
    B = x_nchw.shape[0]
    outs = []
    for k in (3, 4, 5):
        y = jax.lax.conv_general_dilated(
            x_nchw, p[f'conv{k}_w'], (1, 1), 'VALID',
            dimension_numbers=('NCHW', 'OIHW', 'NCHW'))
        y = y + p[f'conv{k}_b'].reshape(1, -1, 1, 1)
        y = (y - p[f'bn{k}_mean'].reshape(1, -1, 1, 1)) / \
            jnp.sqrt(p[f'bn{k}_var'].reshape(1, -1, 1, 1) + EPS)
        y = y * p[f'bn{k}_gamma'].reshape(1, -1, 1, 1) + p[f'bn{k}_beta'].reshape(1, -1, 1, 1)
        y = jnp.maximum(y, 0.0)
        y = jnp.max(y, axis=2, keepdims=True)     # pool window == full time axis
        outs.append(y)                            # [B, F, 1, 1]
    cat = jnp.concatenate(outs, axis=-1)          # [B, F, 1, 3]
    flat = cat.reshape(B, -1)                     # [B, 3F] (f*3 + unit order)
    return flat @ p['lin_w'].T + p['lin_b']


if __name__ == "__main__":
    B, E, F, C = 2, 32, 8, 4       # batch, embeddings, filternum, class_size
    L = 59                          # maxlength (must equal the hardcoded config=59)

    key = jax.random.PRNGKey(0)
    kx, kparam = jax.random.split(key)
    x = jax.random.normal(kx, (B, 1, L, E), jnp.float32)   # PyTorch NCHW input

    pt_params = init_pt_params(kparam, E, F, C)
    k_params = to_kernel_params(pt_params, E, F, C, L)

    out = textcnn_forward(x, k_params, class_size=C, maxlength=L)
    out = jax.block_until_ready(out)

    ref = jax.block_until_ready(reference_forward(x, pt_params))
    assert out.shape == (B, C)
    # bf16 activation / conv / classifier weights -> looser tolerance than pure f32.
    assert jnp.allclose(out, ref, rtol=4e-2, atol=4e-2), (out, ref)

    print("KERNEL_OK")
</pallas_src>

<mosaic_0001>
module attributes {stable_mosaic.version = 11 : i64} {
  func.func @textcnn_kernel(%arg0: i32, %arg1: memref<2x72x32xbf16, #tpu.memory_space<vmem>>, %arg2: memref<160x24xbf16, #tpu.memory_space<vmem>>, %arg3: memref<64x24xf32, #tpu.memory_space<vmem>>, %arg4: memref<24x128xbf16, #tpu.memory_space<vmem>>, %arg5: memref<1x128xf32, #tpu.memory_space<vmem>>, %arg6: memref<2x128xf32, #tpu.memory_space<vmem>>, %arg7: memref<2x64x160xbf16, #tpu.memory_space<vmem>>) attributes {dimension_semantics = [#tpu.dimension_semantics<parallel>], iteration_bounds = array<i64: 1>, scalar_prefetch = 0 : i64, scratch_operands = 1 : i64, tpu.core_type = #tpu.core_type<tc>, window_params = [{transform_indices = @transform_0, window_bounds = array<i64: 2, 72, 32>}, {pipeline_mode = #tpu.pipeline_mode<synchronous>, transform_indices = @transform_1, window_bounds = array<i64: 160, 24>}, {pipeline_mode = #tpu.pipeline_mode<synchronous>, transform_indices = @transform_2, window_bounds = array<i64: 64, 24>}, {pipeline_mode = #tpu.pipeline_mode<synchronous>, transform_indices = @transform_3, window_bounds = array<i64: 24, 128>}, {pipeline_mode = #tpu.pipeline_mode<synchronous>, transform_indices = @transform_4, window_bounds = array<i64: 1, 128>}, {transform_indices = @transform_5, window_bounds = array<i64: 2, 128>}]} {
    %c0 = arith.constant 0 : index
    %c0_0 = arith.constant 0 : index
    %c0_1 = arith.constant 0 : index
    %0 = vector.load %arg1[%c0, %c0_0, %c0_1] : memref<2x72x32xbf16, #tpu.memory_space<vmem>>, vector<2x72x32xbf16>
    %1 = vector.extract_strided_slice %0 {offsets = [0, 0, 0], sizes = [2, 64, 32], strides = [1, 1, 1]} : vector<2x72x32xbf16> to vector<2x64x32xbf16>
    %c0_2 = arith.constant 0 : index
    %c0_3 = arith.constant 0 : index
    %c0_4 = arith.constant 0 : index
    %2 = vector.load %arg7[%c0_2, %c0_3, %c0_4] : memref<2x64x160xbf16, #tpu.memory_space<vmem>>, vector<2x64x32xbf16>
    tpu.vector_store %arg7[%c0_2, %c0_3, %c0_4], %1 {strides = array<i32>} : memref<2x64x160xbf16, #tpu.memory_space<vmem>>, vector<2x64x32xbf16>,
    %3 = vector.extract_strided_slice %0 {offsets = [0, 1, 0], sizes = [2, 64, 32], strides = [1, 1, 1]} : vector<2x72x32xbf16> to vector<2x64x32xbf16>
    %c0_5 = arith.constant 0 : index
    %c0_6 = arith.constant 0 : index
    %c32 = arith.constant 32 : index
    %4 = vector.load %arg7[%c0_5, %c0_6, %c32] : memref<2x64x160xbf16, #tpu.memory_space<vmem>>, vector<2x64x32xbf16>
    tpu.vector_store %arg7[%c0_5, %c0_6, %c32], %3 {strides = array<i32>} : memref<2x64x160xbf16, #tpu.memory_space<vmem>>, vector<2x64x32xbf16>,
    %5 = vector.extract_strided_slice %0 {offsets = [0, 2, 0], sizes = [2, 64, 32], strides = [1, 1, 1]} : vector<2x72x32xbf16> to vector<2x64x32xbf16>
    %c0_7 = arith.constant 0 : index
    %c0_8 = arith.constant 0 : index
    %c64 = arith.constant 64 : index
    %6 = vector.load %arg7[%c0_7, %c0_8, %c64] : memref<2x64x160xbf16, #tpu.memory_space<vmem>>, vector<2x64x32xbf16>
    tpu.vector_store %arg7[%c0_7, %c0_8, %c64], %5 {strides = array<i32>} : memref<2x64x160xbf16, #tpu.memory_space<vmem>>, vector<2x64x32xbf16>,
    %7 = vector.extract_strided_slice %0 {offsets = [0, 3, 0], sizes = [2, 64, 32], strides = [1, 1, 1]} : vector<2x72x32xbf16> to vector<2x64x32xbf16>
    %c0_9 = arith.constant 0 : index
    %c0_10 = arith.constant 0 : index
    %c96 = arith.constant 96 : index
    %8 = vector.load %arg7[%c0_9, %c0_10, %c96] : memref<2x64x160xbf16, #tpu.memory_space<vmem>>, vector<2x64x32xbf16>
    tpu.vector_store %arg7[%c0_9, %c0_10, %c96], %7 {strides = array<i32>} : memref<2x64x160xbf16, #tpu.memory_space<vmem>>, vector<2x64x32xbf16>,
    %9 = vector.extract_strided_slice %0 {offsets = [0, 4, 0], sizes = [2, 64, 32], strides = [1, 1, 1]} : vector<2x72x32xbf16> to vector<2x64x32xbf16>
    %c0_11 = arith.constant 0 : index
    %c0_12 = arith.constant 0 : index
    %c128 = arith.constant 128 : index
    %10 = vector.load %arg7[%c0_11, %c0_12, %c128] : memref<2x64x160xbf16, #tpu.memory_space<vmem>>, vector<2x64x32xbf16>
    tpu.vector_store %arg7[%c0_11, %c0_12, %c128], %9 {strides = array<i32>} : memref<2x64x160xbf16, #tpu.memory_space<vmem>>, vector<2x64x32xbf16>,
    %c0_13 = arith.constant 0 : index
    %c0_14 = arith.constant 0 : index
    %c0_15 = arith.constant 0 : index
    %11 = vector.load %arg7[%c0_13, %c0_14, %c0_15] : memref<2x64x160xbf16, #tpu.memory_space<vmem>>, vector<2x64x160xbf16>
    %12 = vector.shape_cast %11 : vector<2x64x160xbf16> to vector<128x160xbf16>
    %c0_16 = arith.constant 0 : index
    %c0_17 = arith.constant 0 : index
    %13 = vector.load %arg2[%c0_16, %c0_17] : memref<160x24xbf16, #tpu.memory_space<vmem>>, vector<160x24xbf16>
    %cst = arith.constant dense<0.000000e+00> : vector<128x24xf32>
    %14 = tpu.matmul %12, %13, %cst {dimension_numbers = #tpu.dot_dimension_numbers<[1], [0], [0], [1], [0, 0, 1, 1], [], []>} : vector<128x160xbf16>, vector<160x24xbf16>, vector<128x24xf32> -> vector<128x24xf32>
    %15 = vector.shape_cast %14 : vector<128x24xf32> to vector<2x64x24xf32>
    %c0_18 = arith.constant 0 : index
    %c0_19 = arith.constant 0 : index
    %16 = vector.load %arg3[%c0_18, %c0_19] : memref<64x24xf32, #tpu.memory_space<vmem>>, vector<64x24xf32>
    %17 = vector.shape_cast %16 : vector<64x24xf32> to vector<1x64x24xf32>
    %18 = vector.broadcast %17 : vector<1x64x24xf32> to vector<2x64x24xf32>
    %19 = arith.addf %15, %18 : vector<2x64x24xf32>
    %cst_20 = arith.constant 0.000000e+00 : f32
    %20 = vector.broadcast %cst_20 : f32 to vector<2x64x24xf32>
    %21 = arith.maximumf %19, %20 : vector<2x64x24xf32>
    %cst_21 = arith.constant dense<0xFF800000> : vector<2x24xf32>
    %22 = vector.multi_reduction <maximumf>, %21, %cst_21 [1] : vector<2x64x24xf32> to vector<2x24xf32>
    %23 = arith.truncf %22 : vector<2x24xf32> to vector<2x24xbf16>
    %c0_22 = arith.constant 0 : index
    %c0_23 = arith.constant 0 : index
    %24 = vector.load %arg4[%c0_22, %c0_23] : memref<24x128xbf16, #tpu.memory_space<vmem>>, vector<24x128xbf16>
    %cst_24 = arith.constant dense<0.000000e+00> : vector<2x128xf32>
    %25 = tpu.matmul %23, %24, %cst_24 {dimension_numbers = #tpu.dot_dimension_numbers<[1], [0], [0], [1], [0, 0, 1, 1], [], []>} : vector<2x24xbf16>, vector<24x128xbf16>, vector<2x128xf32> -> vector<2x128xf32>
    %c0_25 = arith.constant 0 : index
    %c0_26 = arith.constant 0 : index
    %26 = vector.load %arg5[%c0_25, %c0_26] : memref<1x128xf32, #tpu.memory_space<vmem>>, vector<1x128xf32>
    %27 = vector.broadcast %26 : vector<1x128xf32> to vector<2x128xf32>
    %28 = arith.addf %25, %27 : vector<2x128xf32>
    %c0_27 = arith.constant 0 : index
    %c0_28 = arith.constant 0 : index
    %29 = vector.load %arg6[%c0_27, %c0_28] : memref<2x128xf32, #tpu.memory_space<vmem>>, vector<2x128xf32>
    tpu.vector_store %arg6[%c0_27, %c0_28], %28 {strides = array<i32>} : memref<2x128xf32, #tpu.memory_space<vmem>>, vector<2x128xf32>,
    return
  }
  func.func @transform_0(%arg0: i32) -> (i32, i32, i32) {
    %c0_i32 = arith.constant 0 : i32
    %c0_i32_0 = arith.constant 0 : i32
    %c0_i32_1 = arith.constant 0 : i32
    return %arg0, %c0_i32, %c0_i32_0 : i32, i32, i32
  }
  func.func @transform_1(%arg0: i32) -> (i32, i32) {
    %c0_i32 = arith.constant 0 : i32
    %c0_i32_0 = arith.constant 0 : i32
    %c0_i32_1 = arith.constant 0 : i32
    return %c0_i32, %c0_i32_0 : i32, i32
  }
  func.func @transform_2(%arg0: i32) -> (i32, i32) {
    %c0_i32 = arith.constant 0 : i32
    %c0_i32_0 = arith.constant 0 : i32
    %c0_i32_1 = arith.constant 0 : i32
    return %c0_i32, %c0_i32_0 : i32, i32
  }
  func.func @transform_3(%arg0: i32) -> (i32, i32) {
    %c0_i32 = arith.constant 0 : i32
    %c0_i32_0 = arith.constant 0 : i32
    %c0_i32_1 = arith.constant 0 : i32
    return %c0_i32, %c0_i32_0 : i32, i32
  }
  func.func @transform_4(%arg0: i32) -> (i32, i32) {
    %c0_i32 = arith.constant 0 : i32
    %c0_i32_0 = arith.constant 0 : i32
    %c0_i32_1 = arith.constant 0 : i32
    return %c0_i32, %c0_i32_0 : i32, i32
  }
  func.func @transform_5(%arg0: i32) -> (i32, i32) {
    %c0_i32 = arith.constant 0 : i32
    %c0_i32_0 = arith.constant 0 : i32
    return %arg0, %c0_i32 : i32, i32
  }
}

</mosaic_0001>

<bundles_post_ra>
// kernel: tpu_custom_call.1
= control target key start
LH: loop header
LB: loop body
LE: loop exit
PB: predicated region body
PF: predicated region fallthrough
CT: control target
= control target key end

     0   :  { %vm209_vm0 = vcmask 1046528   ;;  %vm261_vm1 = vsmask.f32 6400  ;;  %vm103_vm2 = vsmask.f32 7424  ;;  %vm88_vm3 = vcmask 261120   ;;  %s1259_s0 = inlined_call_operand.vmem [shape: bf16[2,72,32], index: 0, kind: input, shape index: {}]   ;;  %s1260_s1 = inlined_call_operand.vmem [shape: bf16[160,24], index: 1, kind: input, shape index: {}]   ;;  %s1261_s2 = inlined_call_operand.vmem [shape: f32[64,24], index: 2, kind: input, shape index: {}]   ;;  %s1262_s3 = inlined_call_operand.vmem [shape: bf16[24,128], index: 3, kind: input, shape index: {}]   ;;  %s1263_s4 = inlined_call_operand.vmem [shape: f32[1,128], index: 4, kind: input, shape index: {}]   ;;  %s1264_s5 = inlined_call_operand.hbm [shape: f32[2,128], index: 5, kind: output, shape index: {}]  }
   0x1   :  { %v918_v0 = vld [vmem:[%s1259_s0] sm:$0xff]   ;;  %v923_v1 = vld [vmem:[%s1259_s0 + $0x8] sm:$0xff]   ;;  %v935_v9 = vld [vmem:[%s1259_s0 + $0x10] sm:$0xff]   ;;  %s878_s24 = smov 64   ;;  %s879_s8 = smov 96   ;;  %vm337_vm4 = vcmask 1045504  }
   0x2   :  { %v210_v2 = vrot.slane %v918_v0, 1  ;;  %v211_v3 = vrot.slane %v923_v1, 1  ;;  %v105_v4 = vshrl.u32 %v918_v0, 16  ;;  %v107_v5 = vshll.u32 %v918_v0, 16  ;;  %v941_v14 = vld [vmem:[%s1259_s0 + $0x18] sm:$0xff]   ;;  %v946_v15 = vld [vmem:[%s1259_s0 + $0x2c] sm:$0xff]  }
   0x3   :  { %v112_v6 = vshll.u32 %v923_v1, 16  ;;  %v116_v7 = vshrl.u32 %v923_v1, 16  ;;  %89 = vst.msk [vmem:[#allocation2] sm:$0xff] %vm88_vm3, %v918_v0  ;;  %90 = vst.msk [vmem:[#allocation2 + $0x10] sm:$0xff] %vm88_vm3, %v923_v1  ;;  %v120_v18 = vshll.u32 %v935_v9, 16  ;;  %v213_v21 = vrot.slane %v935_v9, 1 }
   0x4   :  { %v212_v8 = vsel %vm209_vm0, %v210_v2, %v211_v3  ;;  %v262_v10 = vrot.slane %v105_v4, 1  ;;  %v263_v11 = vrot.slane %v107_v5, 2  ;;  %v109_v16 = vrot.slane %v107_v5, 1  ;;  %91 = vst.msk [vmem:[#allocation2 + $0x20] sm:$0xff] %vm88_vm3, %v935_v9  ;;  %92 = vst.msk [vmem:[#allocation2 + $0x30] sm:$0xff] %vm88_vm3, %v941_v14  ;;  %v964_v27 = vld [vmem:[%s1259_s0 + $0x34] sm:$0xff]  }
   0x5   :  { %228 = vrot.lane.b32.xlu0 %v212_v8, %s878_s24  ;;  %v265_v12 = vrot.slane %v116_v7, 1  ;;  %v266_v13 = vrot.slane %v112_v6, 2  ;;  %v114_v17 = vrot.slane %v112_v6, 1  ;;  %v124_v22 = vshrl.u32 %v935_v9, 16  ;;  %94 = vst.msk [vmem:[#allocation2 + $0x50] sm:$0xff] %vm88_vm3, %v946_v15  ;;  %v969_v28 = vld [vmem:[%s1259_s0 + $0x3c] sm:$0xff]  }
   0x6   :  { %v264_v19 = vor.u32 %v263_v11, %v262_v10  ;;  %v110_v23 = vor.u32 %v109_v16, %v105_v4  ;;  %v122_v25 = vrot.slane %v120_v18, 1  ;;  %v270_v26 = vrot.slane %v120_v18, 2  ;;  %95 = vst.msk [vmem:[#allocation2 + $0x60] sm:$0xff] %vm88_vm3, %v964_v27  ;;  %96 = vst.msk [vmem:[#allocation2 + $0x70] sm:$0xff] %vm88_vm3, %v969_v28  ;;  %v983_v34 = vld [vmem:[%s1259_s0 + $0x24] sm:$0xff]   ;;  %s880_s11 = smov 32  }
   0x7   :  { %v267_v20 = vor.u32 %v266_v13, %v265_v12  ;;  %v118_v24 = vor.u32 %v116_v7, %v114_v17  ;;  %v269_v30 = vrot.slane %v124_v22, 1  ;;  %v128_v31 = vshll.u32 %v941_v14, 16  ;;  %93 = vst.msk [vmem:[#allocation2 + $0x40] sm:$0xff] %vm88_vm3, %v983_v34  ;;  %v838_v49 = vld [vmem:[%s1259_s0 + $0x20] ss:$0 sps:$4 sm:$0xff]  }
   0x8   :  { %v115_v32 = vsel %vm103_vm2, %v110_v23, %v114_v17  ;;  %v214_v33 = vsel %vm209_vm0, %v211_v3, %v213_v21  ;;  %v126_v37 = vor.u32 %v124_v22, %v122_v25  ;;  %v132_v38 = vshrl.u32 %v941_v14, 16 }
   0x9   :  { %v268_v29 = vsel %vm261_vm1, %v264_v19, %v267_v20  ;;  %176 = vrot.lane.b32.xlu0 %v115_v32, %s880_s11  ;;  %v123_v35 = vsel %vm103_vm2, %v118_v24, %v122_v25  ;;  %v271_v36 = vor.u32 %v270_v26, %v269_v30  ;;  %v130_v39 = vrot.slane %v128_v31, 1  ;;  %v842_v26 = vld [vmem:[%s1260_s1] sm:$0xff]  }
   0xa   :  { %304 = vrot.lane.b32.xlu1 %v268_v29, %s879_s8  ;;  %v274_v40 = vrot.slane %v128_v31, 2  ;;  %v148_v41 = vshll.u32 %v946_v15, 16  ;;  %v156_v42 = vshll.u32 %v964_v27, 16  ;;  %v273_v43 = vrot.slane %v132_v38, 1 }
   0xb   :  { %v215_v44 = vrot.slane %v941_v14, 1  ;;  %v152_v46 = vshrl.u32 %v946_v15, 16  ;;  %v272_v47 = vsel %vm261_vm1, %v267_v20, %v271_v36  ;;  %v160_v48 = vshrl.u32 %v964_v27, 16 }
   0xc   :  { %v994_v45 = vrot.slane %v148_v41, 1  ;;  %v131_v50 = vsel %vm103_vm2, %v126_v37, %v130_v39  ;;  %v275_v51 = vor.u32 %v274_v40, %v273_v43  ;;  %v158_v52 = vrot.slane %v156_v42, 1 }
   0xd   :  { %230 = vrot.lane.b32.xlu0 %v214_v33, %s878_s24  ;;  %v220_v53 = vrot.slane %v946_v15, 1  ;;  %v222_v54 = vrot.slane %v964_v27, 1  ;;  %v216_v55 = vsel %vm209_vm0, %v213_v21, %v215_v44  ;;  %v286_v57 = vrot.slane %v152_v46, 1 }
   0xe   :  { %178 = vrot.lane.b32.xlu1 %v123_v35, %s880_s11  ;;  %v154_v56 = vor.u32 %v152_v46, %v994_v45  ;;  %v287_v58 = vrot.slane %v148_v41, 2  ;;  %v290_v59 = vrot.slane %v160_v48, 1  ;;  %v291_v60 = vrot.slane %v156_v42, 2 }
   0xf   :  { %v343_v61 = vrot.slane %v941_v14, 2  ;;  %v345_v62 = vrot.slane %v838_v49, 2  ;;  %v276_v63 = vsel %vm261_vm1, %v271_v36, %v275_v51  ;;  %v136_v2 = vshll.u32 %v838_v49, 16 }
  0x10   :  { %v277_v3 = vshrl.u32 %v838_v49, 16  ;;  %v159_v5 = vsel %vm103_vm2, %v154_v56, %v158_v52  ;;  %v1017_v6 = vor.u32 %v287_v58, %v286_v57  ;;  %v1019_v7 = vor.u32 %v291_v60, %v290_v59 }
  0x11   :  { %180 = vrot.lane.b32.xlu0 %v131_v50, %s880_s11  ;;  %v346_v4 = vsel %vm337_vm4, %v343_v61, %v345_v62  ;;  %v280_v10 = vrot.slane %v136_v2, 2  ;;  %v338_v11 = vrot.slane %v918_v0, 2  ;;  %v223_v12 = vsel %vm209_vm0, %v220_v53, %v222_v54  ;;  %v1034_v0 = vld [vmem:[%s1259_s0 + $0x44] ss:$0 sps:$4 sm:$0xff]  }
  0x12   :  { %306 = vrot.lane.b32.xlu1 %v272_v47, %s879_s8  ;;  %367 = vst.msk [vmem:[#allocation2 + $0x38] sm:$0xff] %vm88_vm3, %v346_v4  ;;  %v279_v8 = vrot.slane %v277_v3, 1  ;;  %v134_v13 = vor.u32 %v132_v38, %v130_v39  ;;  %v138_v14 = vrot.slane %v136_v2, 1  ;;  %v339_v16 = vrot.slane %v923_v1, 2 }
  0x13   :  { %v341_v17 = vrot.slane %v935_v9, 2  ;;  %v217_v18 = vrot.slane %v838_v49, 1  ;;  %v164_v19 = vshll.u32 %v969_v28, 16  ;;  %v348_v20 = vrot.slane %v946_v15, 2 }
  0x14   :  { %v293_v1 = vsel %vm261_vm1, %v1017_v6, %v1019_v7  ;;  %v281_v21 = vor.u32 %v280_v10, %v279_v8  ;;  %v168_v9 = vshrl.u32 %v969_v28, 16  ;;  %v139_v22 = vsel %vm103_vm2, %v134_v13, %v138_v14 }
  0x15   :  { %308 = vrot.lane.b32.xlu0 %v276_v63, %s879_s8  ;;  %v143_v23 = vshll.u32 %v983_v34, 16  ;;  %v352_v24 = vrot.slane %v969_v28, 2  ;;  %v354_v25 = vrot.slane %v1034_v0, 2  ;;  %v350_v29 = vrot.slane %v964_v27, 2 }
  0x16   :  { %232 = vrot.lane.b32.xlu1 %v216_v55, %s878_s24  ;;  %v218_v30 = vsel %vm209_vm0, %v215_v44, %v217_v18  ;;  %v162_v31 = vor.u32 %v160_v48, %v158_v52  ;;  %v166_v32 = vrot.slane %v164_v19, 1  ;;  %v224_v33 = vrot.slane %v969_v28, 1 }
  0x17   :  { %v347_v35 = vrot.slane %v983_v34, 2  ;;  %v355_v36 = vsel %vm337_vm4, %v352_v24, %v354_v25 }
  0x19   :  { %238 = vrot.lane.b32.xlu0 %v223_v12, %s878_s24 }
  0x1a   :  { %186 = vrot.lane.b32.xlu1 %v159_v5, %s880_s11 }
  0x1e   :  { %314 = vrot.lane.b32.xlu1 %v293_v1, %s879_s8 }
  0x1f   :  { %10 = vsyncpa [#allocation4], 0  ;;  %182 = vrot.lane.b32.xlu0 %v139_v22, %s880_s11  ;;  %v282_v37 = vsel %vm261_vm1, %v275_v51, %v281_v21  ;;  %v294_v38 = vrot.slane %v168_v9, 1  ;;  %v295_v39 = vrot.slane %v164_v19, 2  ;;  %v141_v40 = vshrl.u32 %v983_v34, 16  ;;  %371 = vst.msk [vmem:[#allocation2 + $0x78] sm:$0xff] %vm88_vm3, %v355_v36 }
  0x20   :  { %v881_v41 = vmov 0   ;;  %v145_v42 = vrot.slane %v143_v23, 1  ;;  %v843_v43 = vld [vmem:[%s1260_s1 + $0x8] sm:$0xff]   ;;  %v340_v44 = vsel %vm337_vm4, %v338_v11, %v339_v16  ;;  %v342_v46 = vsel %vm337_vm4, %v339_v16, %v341_v17  ;;  %v844_v59 = vld [vmem:[%s1260_s1 + $0x10] sm:$0xff]   ;;  %v845_v2 = vld [vmem:[%s1260_s1 + $0x18] sm:$0xff]   ;;  %s884_s29 = smov [#allocation3]  }
  0x21   :  { %492 = vmatprep.subr.bf16.mxu0 %v881_v41  ;;  %805 = vmatprep.subr.bf16.mxu1 %v881_v41  ;;  %v344_v47 = vsel %vm337_vm4, %v341_v17, %v343_v61  ;;  %364 = vst.msk [vmem:[#allocation2 + $0x8] sm:$0xff] %vm88_vm3, %v340_v44  ;;  %365 = vst.msk [vmem:[#allocation2 + $0x18] sm:$0xff] %vm88_vm3, %v342_v46  ;;  %v351_v48 = vsel %vm337_vm4, %v348_v20, %v350_v29  ;;  %v283_v57 = vrot.slane %v141_v40, 1  ;;  %v846_v12 = vld [vmem:[%s1260_s1 + $0x20] sm:$0xff]   ;;  %v847_v13 = vld [vmem:[%s1260_s1 + $0x28] sm:$0xff]   ;;  %vm200_vm5 = vcmask 523520  }
  0x22   :  { %493 = vmatpush1.bf16.msra.mxu0 %v842_v26  ;;  %815 = vmatpush1.bf16.msra.mxu1 %v842_v26  ;;  %366 = vst.msk [vmem:[#allocation2 + $0x28] sm:$0xff] %vm88_vm3, %v344_v47  ;;  %v353_v49 = vsel %vm337_vm4, %v350_v29, %v352_v24  ;;  %369 = vst.msk [vmem:[#allocation2 + $0x58] sm:$0xff] %vm88_vm3, %v351_v48  ;;  %v349_v50 = vsel %vm337_vm4, %v347_v35, %v348_v20  ;;  %v284_v58 = vrot.slane %v143_v23, 2  ;;  %v848_v28 = vld [vmem:[%s1260_s1 + $0x30] sm:$0xff]   ;;  %v849_v16 = vld [vmem:[%s1260_s1 + $0x38] sm:$0xff]   ;;  %vm252_vm6 = vcmask 785920  }
  0x23   :  { %494 = vmatprep.subr.bf16.mxu0 %v881_v41  ;;  %234 = vrot.lane.b32.xlu1 %v218_v30, %s878_s24  ;;  %370 = vst.msk [vmem:[#allocation2 + $0x68] sm:$0xff] %vm88_vm3, %v353_v49  ;;  %v167_v51 = vsel %vm103_vm2, %v162_v31, %v166_v32  ;;  %v296_v52 = vor.u32 %v295_v39, %v294_v38  ;;  %368 = vst.msk [vmem:[#allocation2 + $0x48] sm:$0xff] %vm88_vm3, %v349_v50  ;;  %v172_v60 = vshll.u32 %v1034_v0, 16  ;;  %v850_v17 = vld [vmem:[%s1260_s1 + $0x40] sm:$0xff]   ;;  %v851_v18 = vld [vmem:[%s1260_s1 + $0x48] sm:$0xff]   ;;  %vm328_vm7 = vcmask 1048320  }
  0x24   :  { %806 = vmatprep.subr.bf16.mxu1 %v881_v41  ;;  %310 = vrot.lane.b32.xlu0 %v282_v37, %s879_s8  ;;  %v225_v55 = vsel %vm209_vm0, %v222_v54, %v224_v33  ;;  %v146_v56 = vor.u32 %v145_v42, %v141_v40  ;;  %v219_v54 = vrot.slane %v983_v34, 1  ;;  %v298_v61 = vshrl.u32 %v1034_v0, 16  ;;  %v379_v38 = vld [vmem:[#allocation2 + $0x38] sm:$0xff]  ;;  %s754_s30 = sshll.u32 %s884_s29, 4  ;;  %s755_s30 = int_to_ptr.vmem [resolvable:$true] %s754_s30 }
  0x25   :  { %v297_v27 = vsel %vm261_vm1, %v1019_v7, %v296_v52  ;;  %v285_v63 = vor.u32 %v284_v58, %v283_v57  ;;  %v170_v34 = vor.u32 %v168_v9, %v166_v32  ;;  %v174_v5 = vrot.slane %v172_v60, 1  ;;  %s854_s6 = scalar_lea.vmem %s755_s30, 32  ;;  %p859_p1 = scmp.lt.s32.totalorder %s755_s30, %s755_s30 }
  0x26   :  { %495 = vmatpush1.bf16.msra.mxu0 %v843_v43  ;;  %816 = vmatpush1.bf16.msra.mxu1 %v843_v43  ;;  %v151_v62 = vsel %vm103_vm2, %v146_v56, %v994_v45  ;;  %v221_v45 = vsel %vm209_vm0, %v219_v54, %v220_v53  ;;  %v300_v7 = vrot.slane %v298_v61, 1  ;;  %v301_v8 = vrot.slane %v172_v60, 2  ;;  %v853_v60 = vld [vmem:[%s1262_s3 + $0x8] ss:$0 sps:$4 sm:$0xff]   ;;  %p855_p0 = scmp.ne.s32.totalorder %s755_s30, %s854_s6  ;;  %p860_p2 = scmp.lt.s32.totalorder %s854_s6, %s854_s6 }
  0x27   :  { %496 = vmatprep.subr.bf16.mxu0 %v881_v41  ;;  %188 = vrot.lane.b32.xlu1 %v167_v51, %s880_s11  ;;  %v289_v10 = vsel %vm261_vm1, %v285_v63, %v1017_v6  ;;  %v226_v11 = vrot.slane %v1034_v0, 1  ;;  %v175_v15 = vsel %vm103_vm2, %v170_v34, %v174_v5  ;;  %v387_v51 = vld [vmem:[#allocation2 + $0x78] sm:$0xff]  ;;  %v882_v54 = vmov 0.0   ;;  %v1203_v34 = vld [vmem:[%s1261_s2 + $0x8] sm:$0xff]  ;;  %v591_v5 = vld [vmem:[%s1261_s2 + $0x10] sm:$0xff] }
  0x28   :  { %807 = vmatprep.subr.bf16.mxu1 %v881_v41  ;;  %240 = vrot.lane.b32.xlu0 %v225_v55, %s878_s24  ;;  %v373_v3 = vld [vmem:[#allocation2 + $0x8] sm:$0xff]  ;;  %v302_v53 = vor.u32 %v301_v8, %v300_v7  ;;  %v375_v23 = vld [vmem:[#allocation2 + $0x18] sm:$0xff]  ;;  %vm703_vm8 = vcmask 1043456   ;;  %vm883_vm9 = vmmov 0   ;;  %vm629_vm10 = vcmask 195584   ;;  %p861_p3 = por %p860_p2, %p859_p1 }
  0x29   :  { %v383_v4 = vld [vmem:[#allocation2 + $0x58] sm:$0xff]  ;;  %782 = vmatprep.mubr.msk.bf16.mxu0 %vm88_vm3, %v373_v3  ;;  %v227_v6 = vsel %vm209_vm0, %v224_v33, %v226_v11  ;;  %v377_v31 = vld [vmem:[#allocation2 + $0x28] sm:$0xff]  ;;  %v705_v61 = vsel %vm703_vm8, %v853_v60, 0  ;;  %vm688_vm11 = vcmask 1041409  }
  0x2a   :  { %497 = vmatpush1.bf16.msra.mxu0 %v844_v59  ;;  %817 = vmatpush1.bf16.msra.mxu1 %v844_v59  ;;  %v303_v14 = vsel %vm261_vm1, %v296_v52, %v302_v53  ;;  %v385_v40 = vld [vmem:[#allocation2 + $0x68] sm:$0xff]  ;;  %p862_p4 = pnand %p861_p3, %p855_p0 }
  0x2b   :  { %498 = vmatprep.subr.bf16.mxu0 %v881_v41  ;;  %316 = vrot.lane.b32.xlu1 %v297_v27, %s879_s8  ;;  %v381_v48 = vld [vmem:[#allocation2 + $0x48] sm:$0xff]  ;;  %v852_v27 = vld [vmem:[%s1262_s3] sm:$0xff]  }
  0x2c   :  { %808 = vmatprep.subr.bf16.mxu1 %v881_v41  ;;  %184 = vrot.lane.b32.xlu0 %v151_v62, %s880_s11 }
  0x2d   :  { %787 = vmatprep.mubr.msk.bf16.mxu1 %vm88_vm3, %v383_v4 }
  0x2e   :  { %499 = vmatpush1.bf16.msra.mxu0 %v845_v2  ;;  %818 = vmatpush1.bf16.msra.mxu1 %v845_v2  ;;  %v1198_v2 = vld [vmem:[%s1261_s2] sm:$0xff] }
  0x2f   :  { %500 = vmatprep.subr.bf16.mxu0 %v881_v41  ;;  %236 = vrot.lane.b32.xlu1 %v221_v45, %s878_s24 }
  0x30   :  { %809 = vmatprep.subr.bf16.mxu1 %v881_v41  ;;  %312 = vrot.lane.b32.xlu0 %v289_v10, %s879_s8  ;;  %v592_v10 = vld [vmem:[%s1261_s2 + $0x18] sm:$0xff] }
  0x32   :  { %501 = vmatpush1.bf16.msra.mxu0 %v846_v12  ;;  %819 = vmatpush1.bf16.msra.mxu1 %v846_v12 }
  0x33   :  { %502 = vmatprep.subr.bf16.mxu0 %v881_v41  ;;  %190 = vrot.lane.b32.xlu1 %v175_v15, %s880_s11 }
  0x34   :  { %810 = vmatprep.subr.bf16.mxu1 %v881_v41  ;;  %242 = vrot.lane.b32.xlu0 %v227_v6, %s878_s24 }
  0x36   :  { %503 = vmatpush1.bf16.msra.mxu0 %v847_v13  ;;  %820 = vmatpush1.bf16.msra.mxu1 %v847_v13 }
  0x37   :  { %504 = vmatprep.subr.bf16.mxu0 %v881_v41  ;;  %318 = vrot.lane.b32.xlu1 %v303_v14, %s879_s8 }
  0x38   :  { %811 = vmatprep.subr.bf16.mxu1 %v881_v41 }
  0x3a   :  { %505 = vmatpush1.bf16.msra.mxu0 %v848_v28  ;;  %821 = vmatpush1.bf16.msra.mxu1 %v848_v28 }
  0x3b   :  { %506 = vmatprep.subr.bf16.mxu0 %v881_v41  ;;  %812 = vmatprep.subr.bf16.mxu1 %v881_v41 }
  0x3e   :  { %507 = vmatpush1.bf16.msra.mxu0 %v849_v16  ;;  %822 = vmatpush1.bf16.msra.mxu1 %v849_v16 }
  0x3f   :  { %508 = vmatprep.subr.bf16.mxu0 %v881_v41  ;;  %813 = vmatprep.subr.bf16.mxu1 %v881_v41 }
  0x42   :  { %509 = vmatpush1.bf16.msra.mxu0 %v850_v17  ;;  %823 = vmatpush1.bf16.msra.mxu1 %v850_v17 }
  0x43   :  { %510 = vmatprep.subr.bf16.mxu0 %v881_v41  ;;  %814 = vmatprep.subr.bf16.mxu1 %v881_v41 }
  0x46   :  { %511 = vmatpush1.bf16.msra.mxu0 %v851_v18  ;;  %824 = vmatpush1.bf16.msra.mxu1 %v851_v18 }
  0x47   :  { %797 = vmatprep.subr.bf16.mxu1 %v882_v54 }
  0x77   :  { %v229_v19 = vpop.permute.xlu0 %228 }
  0x7b   :  { %v177_v20 = vpop.permute.xlu0 %176 }
  0x7c   :  { %v305_v0 = vpop.permute.xlu1 %304  ;;  %201 = vst.msk [vmem:[#allocation2] sm:$0xff] %vm200_vm5, %v177_v20 }
  0x7d   :  { %253 = vst.msk [vmem:[#allocation2] sm:$0xff] %vm252_vm6, %v229_v19 }
  0x7e   :  { %329 = vst.msk [vmem:[#allocation2] sm:$0xff] %vm328_vm7, %v305_v0  ;;  %v593_v0 = vld [vmem:[%s1261_s2 + $0x20] sm:$0xff] }
  0x7f   :  { %v231_v21 = vpop.permute.xlu0 %230 }
  0x80   :  { %v179_v1 = vpop.permute.xlu1 %178 }
  0x81   :  { %202 = vst.msk [vmem:[#allocation2 + $0x10] sm:$0xff] %vm200_vm5, %v179_v1 }
  0x82   :  { %254 = vst.msk [vmem:[#allocation2 + $0x10] sm:$0xff] %vm252_vm6, %v231_v21 }
  0x83   :  { %v181_v22 = vpop.permute.xlu0 %180 }
  0x84   :  { %v307_v9 = vpop.permute.xlu1 %306  ;;  %203 = vst.msk [vmem:[#allocation2 + $0x20] sm:$0xff] %vm200_vm5, %v181_v22  ;;  %v594_v22 = vld [vmem:[%s1261_s2 + $0x28] sm:$0xff] }
  0x85   :  { %330 = vst.msk [vmem:[#allocation2 + $0x10] sm:$0xff] %vm328_vm7, %v307_v9  ;;  %v372_v24 = vld [vmem:[#allocation2] sm:$0xff] }
  0x86   :  { %525 = vmatmul.mubr.bf16.vlgmr.msra.gmra.mrb[0].mxu0 %v372_v24 }
  0x87   :  { %v309_v26 = vpop.permute.xlu0 %308  ;;  %783 = vmatprep.mubr.msk.bf16.mxu0 %vm88_vm3, %v375_v23 }
  0x88   :  { %v233_v25 = vpop.permute.xlu1 %232 }
  0x89   :  { %255 = vst.msk [vmem:[#allocation2 + $0x20] sm:$0xff] %vm252_vm6, %v233_v25 }
  0x8a   :  { %331 = vst.msk [vmem:[#allocation2 + $0x20] sm:$0xff] %vm328_vm7, %v309_v26 }
  0x8b   :  { %v239_v30 = vpop.permute.xlu0 %238 }
  0x8c   :  { %v187_v29 = vpop.permute.xlu1 %186  ;;  %v374_v32 = vld [vmem:[#allocation2 + $0x10] sm:$0xff] }
  0x8d   :  { %206 = vst.msk [vmem:[#allocation2 + $0x50] sm:$0xff] %vm200_vm5, %v187_v29 }
  0x8e   :  { %258 = vst.msk [vmem:[#allocation2 + $0x50] sm:$0xff] %vm252_vm6, %v239_v30  ;;  %533 = vmatmul.mubr.bf16.gmra.mrb[4].mxu0 %v374_v32 }
  0x8f   :  { %784 = vmatprep.mubr.msk.bf16.mxu0 %vm88_vm3, %v377_v31 }
  0x90   :  { %v315_v33 = vpop.permute.xlu1 %314 }
  0x91   :  { %334 = vst.msk [vmem:[#allocation2 + $0x50] sm:$0xff] %vm328_vm7, %v315_v33  ;;  %v183_v35 = vpop.permute.xlu0 %182  ;;  %v376_v39 = vld [vmem:[#allocation2 + $0x20] sm:$0xff] }
  0x92   :  { %204 = vst.msk [vmem:[#allocation2 + $0x30] sm:$0xff] %vm200_vm5, %v183_v35 }
  0x95   :  { %v235_v36 = vpop.permute.xlu1 %234 }
  0x96   :  { %256 = vst.msk [vmem:[#allocation2 + $0x30] sm:$0xff] %vm252_vm6, %v235_v36  ;;  %v311_v37 = vpop.permute.xlu0 %310  ;;  %541 = vmatmul.mubr.bf16.gmra.mrb[8].mxu0 %v376_v39  ;;  %v595_v39 = vld [vmem:[%s1261_s2 + $0x30] sm:$0xff] }
  0x97   :  { %332 = vst.msk [vmem:[#allocation2 + $0x30] sm:$0xff] %vm328_vm7, %v311_v37  ;;  %785 = vmatprep.mubr.msk.bf16.mxu0 %vm88_vm3, %v379_v38 }
  0x98   :  { %v382_v42 = vld [vmem:[#allocation2 + $0x50] sm:$0xff] }
  0x99   :  { %v189_v41 = vpop.permute.xlu1 %188  ;;  %565 = vmatmul.mubr.bf16.vlgmr.msra.gmra.mrb[0].mxu1 %v382_v42 }
  0x9a   :  { %207 = vst.msk [vmem:[#allocation2 + $0x60] sm:$0xff] %vm200_vm5, %v189_v41  ;;  %v241_v43 = vpop.permute.xlu0 %240  ;;  %788 = vmatprep.mubr.msk.bf16.mxu1 %vm88_vm3, %v385_v40  ;;  %798 = vmatpush3.bf16.msra.mxu1 %v852_v27 }
  0x9b   :  { %259 = vst.msk [vmem:[#allocation2 + $0x60] sm:$0xff] %vm252_vm6, %v241_v43  ;;  %799 = vmatprep.subr.bf16.mxu1 %v882_v54  ;;  %v596_v43 = vld [vmem:[%s1261_s2 + $0x38] sm:$0xff] }
  0x9d   :  { %v317_v44 = vpop.permute.xlu1 %316 }
  0x9e   :  { %335 = vst.msk [vmem:[#allocation2 + $0x60] sm:$0xff] %vm328_vm7, %v317_v44  ;;  %v185_v46 = vpop.permute.xlu0 %184  ;;  %v378_v47 = vld [vmem:[#allocation2 + $0x30] sm:$0xff]  ;;  %800 = vmatpush3.bf16.msra.mxu1 %v705_v61 }
  0x9f   :  { %205 = vst.msk [vmem:[#allocation2 + $0x40] sm:$0xff] %vm200_vm5, %v185_v46  ;;  %549 = vmatmul.mubr.bf16.gmra.mrb[12].mxu0 %v378_v47 }
  0xa0   :  { %786 = vmatprep.mubr.msk.bf16.mxu0 %vm88_vm3, %v381_v48 }
  0xa1   :  { %v237_v49 = vpop.permute.xlu1 %236 }
  0xa2   :  { %257 = vst.msk [vmem:[#allocation2 + $0x40] sm:$0xff] %vm252_vm6, %v237_v49  ;;  %v313_v50 = vpop.permute.xlu0 %312 }
  0xa3   :  { %333 = vst.msk [vmem:[#allocation2 + $0x40] sm:$0xff] %vm328_vm7, %v313_v50 }
  0xa5   :  { %v191_v52 = vpop.permute.xlu1 %190  ;;  %v384_v55 = vld [vmem:[#allocation2 + $0x60] sm:$0xff] }
  0xa6   :  { %208 = vst.msk [vmem:[#allocation2 + $0x70] sm:$0xff] %vm200_vm5, %v191_v52  ;;  %573 = vmatmul.mubr.bf16.gmra.mrb[4].mxu1 %v384_v55  ;;  %v243_v56 = vpop.permute.xlu0 %242 }
  0xa7   :  { %260 = vst.msk [vmem:[#allocation2 + $0x70] sm:$0xff] %vm252_vm6, %v243_v56  ;;  %789 = vmatprep.mubr.msk.bf16.mxu1 %vm88_vm3, %v387_v51 }
  0xa9   :  { %v319_v57 = vpop.permute.xlu1 %318 }
  0xaa   :  { %336 = vst.msk [vmem:[#allocation2 + $0x70] sm:$0xff] %vm328_vm7, %v319_v57  ;;  %v380_v58 = vld [vmem:[#allocation2 + $0x40] sm:$0xff] }
  0xab   :  { %557 = vmatmul.mubr.bf16.gmra.mrb[16].mxu0 %v380_v58 }
  0xb1   :  { %v386_v59 = vld [vmem:[#allocation2 + $0x70] sm:$0xff] }
  0xb2   :  { %581 = vmatmul.mubr.bf16.gmra.mrb[8].mxu1 %v386_v59 }
  0xb3   :  { %801 = vmatprep.mubr.msk.bf16.mxu1 %vm883_vm9, %v882_v54 }
 0x159   :  { %v526_v62 = vpop.f32.mrb[0].mxu0 }
 0x15a   :  { %v528_v63 = vpop.f32.mrb[1].mxu0  ;;  %v597_v45 = vadd.f32 %v1198_v2, %v526_v62 }
 0x15b   :  { %v529_v3 = vpop.f32.mrb[2].mxu0 }
 0x15c   :  { %v531_v4 = vpop.f32.mrb[3].mxu0  ;;  %v598_v7 = vadd.f32 %v1203_v34, %v529_v3  ;;  %v613_v11 = vmax.f32 %v597_v45, 0.0 }
 0x15e   :  { %v614_v6 = vmax.f32 %v598_v7, 0.0  ;;  %v630_v16 = vsel %vm629_vm10, %v613_v11, -inf }
 0x160   :  { %v631_v20 = vsel %vm629_vm10, %v614_v6, -inf }
 0x161   :  { %v534_v8 = vpop.f32.mrb[4].mxu0 }
 0x162   :  { %v599_v12 = vadd.f32 %v591_v5, %v534_v8  ;;  %v536_v15 = vpop.f32.mrb[5].mxu0 }
 0x163   :  { %v537_v53 = vpop.f32.mrb[6].mxu0 }
 0x164   :  { %v615_v13 = vmax.f32 %v599_v12, 0.0  ;;  %v600_v14 = vadd.f32 %v592_v10, %v537_v53  ;;  %v539_v28 = vpop.f32.mrb[7].mxu0 }
 0x166   :  { %v632_v17 = vsel %vm629_vm10, %v615_v13, -inf  ;;  %v616_v18 = vmax.f32 %v600_v14, 0.0 }
 0x167   :  { %v633_v19 = vmax.f32 %v630_v16, %v632_v17 }
 0x168   :  { %v634_v1 = vsel %vm629_vm10, %v616_v18, -inf }
 0x169   :  { %v635_v21 = vmax.f32 %v631_v20, %v634_v1  ;;  %v542_v9 = vpop.f32.mrb[8].mxu0 }
 0x16a   :  { %v601_v23 = vadd.f32 %v593_v0, %v542_v9  ;;  %v544_v24 = vpop.f32.mrb[9].mxu0 }
 0x16b   :  { %v545_v26 = vpop.f32.mrb[10].mxu0 }
 0x16c   :  { %v566_v25 = vpop.f32.mrb[0].mxu1  ;;  %v617_v30 = vmax.f32 %v601_v23, 0.0  ;;  %v602_v31 = vadd.f32 %v594_v22, %v545_v26  ;;  %v547_v32 = vpop.f32.mrb[11].mxu0 }
 0x16d   :  { %v568_v29 = vpop.f32.mrb[1].mxu1  ;;  %v607_v56 = vadd.f32 %v591_v5, %v566_v25 }
 0x16e   :  { %v569_v33 = vpop.f32.mrb[2].mxu1  ;;  %v636_v36 = vsel %vm629_vm10, %v617_v30, -inf  ;;  %v618_v37 = vmax.f32 %v602_v31, 0.0 }
 0x16f   :  { %v571_v35 = vpop.f32.mrb[3].mxu1  ;;  %v637_v38 = vmax.f32 %v633_v19, %v636_v36  ;;  %v608_v61 = vadd.f32 %v592_v10, %v569_v33  ;;  %v623_v63 = vmax.f32 %v607_v56, 0.0  ;;  %v790_v56 = vld [vmem:[%s1263_s4] ss:$0 sm:$0xff] }
 0x170   :  { %v638_v40 = vsel %vm629_vm10, %v618_v37, -inf }
 0x171   :  { %v639_v41 = vmax.f32 %v635_v21, %v638_v40  ;;  %v624_v12 = vmax.f32 %v608_v61, 0.0  ;;  %v653_v13 = vsel %vm629_vm10, %v623_v63, -inf }
 0x172   :  { %v550_v42 = vpop.f32.mrb[12].mxu0 }
 0x173   :  { %v603_v44 = vadd.f32 %v595_v39, %v550_v42  ;;  %v552_v46 = vpop.f32.mrb[13].mxu0  ;;  %v655_v18 = vsel %vm629_vm10, %v624_v12, -inf }
 0x174   :  { %v553_v47 = vpop.f32.mrb[14].mxu0 }
 0x175   :  { %v619_v48 = vmax.f32 %v603_v44, 0.0  ;;  %v604_v49 = vadd.f32 %v596_v43, %v553_v47  ;;  %v555_v50 = vpop.f32.mrb[15].mxu0 }
 0x177   :  { %v640_v51 = vsel %vm629_vm10, %v619_v48, -inf  ;;  %v620_v52 = vmax.f32 %v604_v49, 0.0 }
 0x178   :  { %v641_v57 = vmax.f32 %v637_v38, %v640_v51 }
 0x179   :  { %v574_v55 = vpop.f32.mrb[4].mxu1  ;;  %v642_v59 = vsel %vm629_vm10, %v620_v52, -inf }
 0x17a   :  { %v576_v58 = vpop.f32.mrb[5].mxu1  ;;  %v643_v54 = vmax.f32 %v639_v41, %v642_v59  ;;  %v609_v62 = vadd.f32 %v593_v0, %v574_v55 }
 0x17b   :  { %v577_v27 = vpop.f32.mrb[6].mxu1 }
 0x17c   :  { %v579_v60 = vpop.f32.mrb[7].mxu1  ;;  %v644_v3 = vmax.f32 %v641_v57, %v643_v54  ;;  %v610_v45 = vadd.f32 %v594_v22, %v577_v27  ;;  %v625_v15 = vmax.f32 %v609_v62, 0.0 }
 0x17e   :  { %v558_v4 = vpop.f32.mrb[16].mxu0  ;;  %v645_v14 = vrot.slane %v644_v3, 4  ;;  %v626_v28 = vmax.f32 %v610_v45, 0.0 }
 0x17f   :  { %v605_v7 = vadd.f32 %v1198_v2, %v558_v4  ;;  %v560_v8 = vpop.f32.mrb[17].mxu0  ;;  %v657_v2 = vsel %vm629_vm10, %v625_v15, -inf }
 0x180   :  { %v561_v11 = vpop.f32.mrb[18].mxu0  ;;  %v646_v9 = vmax.f32 %v644_v3, %v645_v14  ;;  %v659_v22 = vsel %vm629_vm10, %v626_v28, -inf }
 0x181   :  { %v621_v5 = vmax.f32 %v605_v7, 0.0  ;;  %v606_v53 = vadd.f32 %v1203_v34, %v561_v11  ;;  %v563_v6 = vpop.f32.mrb[19].mxu0 }
 0x182   :  { %v647_v32 = vrot.slane %v646_v9, 2 }
 0x183   :  { %v651_v10 = vsel %vm629_vm10, %v621_v5, -inf  ;;  %v622_v16 = vmax.f32 %v606_v53, 0.0 }
 0x184   :  { %v654_v17 = vmax.f32 %v651_v10, %v653_v13  ;;  %v648_v37 = vmax.f32 %v646_v9, %v647_v32 }
 0x185   :  { %v652_v19 = vsel %vm629_vm10, %v622_v16, -inf  ;;  %v582_v0 = vpop.f32.mrb[8].mxu1 }
 0x186   :  { %v656_v20 = vmax.f32 %v652_v19, %v655_v18  ;;  %v611_v1 = vadd.f32 %v595_v39, %v582_v0  ;;  %v658_v21 = vmax.f32 %v654_v17, %v657_v2  ;;  %v584_v34 = vpop.f32.mrb[9].mxu1  ;;  %v649_v40 = vrot.slane %v648_v37, 1 }
 0x187   :  { %v585_v23 = vpop.f32.mrb[10].mxu1 }
 0x188   :  { %v627_v24 = vmax.f32 %v611_v1, 0.0  ;;  %v612_v25 = vadd.f32 %v596_v43, %v585_v23  ;;  %v660_v26 = vmax.f32 %v656_v20, %v659_v22  ;;  %v587_v29 = vpop.f32.mrb[11].mxu1  ;;  %v650_v44 = vmax.f32 %v648_v37, %v649_v40 }
 0x18a   :  { %v661_v30 = vsel %vm629_vm10, %v627_v24, -inf  ;;  %v628_v31 = vmax.f32 %v612_v25, 0.0  ;;  %v672_v43 = vpack.c.bf16 %v650_v44, %v650_v44 }
 0x18b   :  { %v662_v33 = vmax.f32 %v658_v21, %v661_v30 }
 0x18c   :  { %v663_v35 = vsel %vm629_vm10, %v628_v31, -inf  ;;  %v686_v50 = vunpack.c.l.b16 %v672_v43 }
 0x18d   :  { %v664_v36 = vmax.f32 %v660_v26, %v663_v35 }
 0x18f   :  { %v665_v38 = vmax.f32 %v662_v33, %v664_v36 }
 0x191   :  { %v666_v39 = vrot.slane %v665_v38, 4 }
 0x193   :  { %v667_v41 = vmax.f32 %v665_v38, %v666_v39 }
 0x195   :  { %v668_v42 = vrot.slane %v667_v41, 2 }
 0x197   :  { %v669_v46 = vmax.f32 %v667_v41, %v668_v42 }
 0x199   :  { %v670_v47 = vrot.slane %v669_v46, 1 }
 0x19b   :  { %v671_v48 = vmax.f32 %v669_v46, %v670_v47 }
 0x19d   :  { %v673_v49 = vpack.c.bf16 %v671_v48, %v671_v48 }
 0x19f   :  { %v687_v51 = vunpack.c.l.b16 %v673_v49 }
 0x1a1   :  { %v689_v52 = vsel %vm688_vm11, %v687_v51, %v686_v50 }
 0x1a2   :  { %v690_v55 = vpack.c.b16 %v689_v52, %v689_v52 }
 0x1a4   :  { %802 = vmatmul.mubr.msk.bf16.vlgmr.msra.gmra.mrb[12].mxu1 %vm629_vm10, %v690_v55 }
 0x277   :  { %v741_v57 = vpop.f32.mrb[12].mxu1 }
 0x278   :  { %v742_v58 = vadd.f32 %v790_v56, %v741_v57  ;;  %v803_v59 = vpop.f32.mrb[13].mxu1 }
 0x279   :  { %v744_v27 = vpop.f32.mrb[14].mxu1 }
 0x27a   :  { %747 = vst [vmem:[#allocation3] sm:$0x3] %v742_v58  ;;  %v804_v54 = vpop.f32.mrb[15].mxu1 }
 0x27b   :  { %865 = shalt.err (!%p862_p4)
}
 0x27c   :  { %s866_s4 = scalar_lea.hbm %s1264_s5, 32 }
 0x27d   :  { %p867_p5 = scmp.ne.s32.totalorder %s1264_s5, %s866_s4  ;;  %p870_p6 = scmp.lt.u32.totalorder %s866_s4, %s1264_s5 }
 0x27f   :  { %p872_p7 = pnand %p870_p6, %p867_p5 }
 0x281   :  { %875 = shalt.err (!%p872_p7)
}
 0x282   :  { %757 = dma.vmem_to_hbm [thread:$0]  %s755_s30, 32, %s1264_s5, [#allocation4]  }
 0x283   :  { %876 = dma.done.wait [#allocation4], 32  }
 0x284   :  { %877 = vsyncadd [#allocation4], 4294967264 }
 0x285   :  { %761 = vsyncpa [#allocation4], 1 }

</bundles_post_ra>
